<compile_context>
chip_gen: v7x
topology: tpu7x:2x2x1
jax: 0.10.0
libtpu: 0.0.40
codegen_flags: <defaults>
</compile_context>

<pallas_src>
import functools

import jax
import jax.numpy as jnp
from jax.experimental import pallas as pl
from jax.experimental.pallas import tpu as pltpu

LANE = 128
FEAT_ALIGN = 256   # v6e/v7x MXU is 2x256x256; 256-multiples fill it (ok on v5e too)
SUBLANE = 8        # f32 sublane granularity


def _round_up(x, m):
    return (x + m - 1) // m * m


def _fnn_fused_kernel(*refs):
    """refs = (x_ref, w0, b0, w1, b1, ..., o_ref). All blocks live in VMEM.

    bf16 operands on the MXU, f32 accumulation via preferred_element_type,
    bias added in f32, inter-layer activations kept in bf16 (halves vreg/VMEM
    pressure at large batch tiles; accuracy preserved by f32 accumulate).
    """
    x_ref = refs[0]
    o_ref = refs[-1]
    wb_refs = refs[1:-1]
    n_layers = len(wb_refs) // 2

    h = x_ref[...]                                    # bf16 [tb, in_p]
    for i in range(n_layers):
        w = wb_refs[2 * i][...]                       # bf16 [in_p_i, out_p_i]
        b = wb_refs[2 * i + 1][...]                   # f32  [1, out_p_i]
        acc = jnp.dot(h, w, preferred_element_type=jnp.float32) + b
        h = acc if i == n_layers - 1 else acc.astype(jnp.bfloat16)
    o_ref[...] = h.astype(o_ref.dtype)                # last layer stays f32


def init_fnn_params(key, dims):
    """nn.Linear-style uniform(-1/sqrt(fan_in), 1/sqrt(fan_in)) init.
    Weights stored transposed: [in_features, out_features]."""
    params = []
    for i in range(len(dims) - 1):
        in_f, out_f = dims[i], dims[i + 1]
        key, kw, kb = jax.random.split(key, 3)
        bound = 1.0 / (in_f ** 0.5)
        w = jax.random.uniform(kw, (in_f, out_f), jnp.float32, -bound, bound)
        b = jax.random.uniform(kb, (out_f,), jnp.float32, -bound, bound)
        params.append((w, b))
    return params


def pad_params_for_kernel(params):
    """One-time: zero-pad every (w, b) to 256-aligned, lane-dense shapes and
    cast weights to bf16 (bias stays f32 for the f32 epilogue add).

    Zero padding keeps the math exact: padded input lanes multiply zero weight
    rows; padded output lanes receive zero weights + zero bias, so they stay
    zero through the whole layer stack.
    """
    padded = []
    for w, b in params:
        in_f, out_f = w.shape
        in_p = _round_up(in_f, FEAT_ALIGN)
        out_p = _round_up(out_f, FEAT_ALIGN)
        wp = (jnp.zeros((in_p, out_p), jnp.float32)
              .at[:in_f, :out_f].set(w).astype(jnp.bfloat16))
        bp = jnp.zeros((1, out_p), jnp.float32).at[0, :out_f].set(b)
        padded.append((wp, bp))
    return padded


def _vmem_plan(params_padded, tb, in_p, out_p, single_buffer_weights):
    """Compute (needed_bytes, cap_bytes, vmem_limit_bytes) for this config."""
    wbuf = 1 if single_buffer_weights else 2
    wb_bytes = wbuf * sum(
        int(w.size) * w.dtype.itemsize + int(b.size) * b.dtype.itemsize
        for w, b in params_padded)
    widths = [int(in_p)] + [int(w.shape[1]) for w, _ in params_padded]
    x_bytes = 2 * tb * in_p * 2            # bf16 input block, double-buffered
    o_bytes = 2 * tb * out_p * 4           # f32 output block, double-buffered
    inter = tb * max(widths) * (4 + 2)     # live f32 acc + bf16 h in the body
    need = wb_bytes + x_bytes + o_bytes + inter
    try:
        phys = int(pltpu.get_tpu_info().vmem_capacity_bytes)
    except Exception:
        phys = 64 << 20                    # conservative: v7x per-TC VMEM
    cap = min(int(phys * 0.8), 100 << 20)  # ~100 MiB max on v5e/v6e, ~51 MiB v7x
    limit = min(max(int(need * 1.5) + (8 << 20), 32 << 20), cap)
    return need, cap, limit


@functools.partial(jax.jit, static_argnames=("out_features", "batch_tile",
                                             "single_buffer_weights"))
def fnn_forward(x, params_padded, *, out_features, batch_tile=512,
                single_buffer_weights=True):
    """Fused FNN forward. x: [batch, in_features] (unpadded, f32)."""
    batch, in_f = x.shape
    in_p = params_padded[0][0].shape[0]
    out_p = params_padded[-1][0].shape[1]

    # ---- batch tiling: tb is always a multiple of 8 (ideally 256) ----
    b_pad = _round_up(batch, SUBLANE)
    tb = _round_up(max(SUBLANE, min(batch_tile, b_pad)), SUBLANE)
    b_pad = _round_up(b_pad, tb)
    # v7x megacore: prefer >= 2 balanced tiles so ("parallel",) uses both TCs.
    if b_pad // tb == 1 and b_pad >= 2 * SUBLANE:
        tb = _round_up(b_pad // 2, SUBLANE)
        b_pad = _round_up(b_pad, tb)
    n_tiles = b_pad // tb

    # ---- VMEM budget / resident-weight check ----
    need, cap, vmem_limit = _vmem_plan(params_padded, tb, in_p, out_p,
                                       single_buffer_weights)
    if need > cap:
        # TODO(synk): weight-streaming fallback (pltpu.emit_pipeline over layers
        # with the activation tile held in VMEM scratch) once resident weights
        # exceed the per-generation VMEM budget (v7x's 64 MiB hits first).
        raise ValueError(f"resident weights ({need} B) exceed VMEM budget "
                         f"({cap} B); streaming path not implemented")

    # Pad batch + features and cast activations to bf16.
    # (For large, mem-bound batches, pre-pad x outside this call instead.)
    xp = (jnp.zeros((b_pad, in_p), jnp.bfloat16)
          .at[:batch, :in_f].set(x.astype(jnp.bfloat16)))

    weight_mode = pl.Buffered(1) if single_buffer_weights else None
    flat_wb = []
    in_specs = [pl.BlockSpec((tb, in_p), lambda i: (i, 0))]
    for w, b in params_padded:
        flat_wb += [w, b]
        # Pinned index_map -> block never changes across grid steps; single
        # buffering halves the resident-weight VMEM footprint.
        in_specs.append(pl.BlockSpec(w.shape, lambda i: (0, 0),
                                     pipeline_mode=weight_mode))
        in_specs.append(pl.BlockSpec(b.shape, lambda i: (0, 0),
                                     pipeline_mode=weight_mode))

    wb_hbm_bytes = sum(int(a.size) * a.dtype.itemsize for a in flat_wb)
    cost = pl.CostEstimate(
        flops=2 * b_pad * sum(int(w.shape[0]) * int(w.shape[1])
                              for w, _ in params_padded),
        transcendentals=0,
        bytes_accessed=b_pad * in_p * 2 + wb_hbm_bytes + b_pad * out_p * 4,
    )

    out_padded = pl.pallas_call(
        _fnn_fused_kernel,
        out_shape=jax.ShapeDtypeStruct((b_pad, out_p), jnp.float32),
        grid_spec=pl.GridSpec(
            grid=(n_tiles,),
            in_specs=in_specs,
            out_specs=pl.BlockSpec((tb, out_p), lambda i: (i, 0)),
        ),
        compiler_params=pltpu.CompilerParams(
            dimension_semantics=("parallel",),   # batch tiles are independent
            vmem_limit_bytes=vmem_limit,
        ),
        cost_estimate=cost,
    )(xp, *flat_wb)

    return out_padded[:batch, :out_features]


def fnn_reference(x, params):
    for w, b in params:
        x = x @ w + b
    return x


if __name__ == "__main__":
    key = jax.random.PRNGKey(0)
    # FNN(32, 64, 48, 16) -> three Linear layers, no activation in forward().
    dims = (32, 64, 48, 16)
    batch = 8

    key, kx = jax.random.split(key)
    x = jax.random.normal(kx, (batch, dims[0]), jnp.float32)

    params = init_fnn_params(key, dims)
    params_padded = pad_params_for_kernel(params)    # once, outside jit

    try:
        out = fnn_forward(x, params_padded, out_features=dims[-1])
    except Exception:
        # Safety net: if this toolchain rejects single-buffered weight blocks,
        # retrace with default double-buffering (correctness identical).
        out = fnn_forward(x, params_padded, out_features=dims[-1],
                          single_buffer_weights=False)
    out = jax.block_until_ready(out)

    # Reference with the same bf16-quantized weights (f32 activations); the
    # remaining delta is only the kernel's bf16 inter-layer rounding.
    params_q = [(w.astype(jnp.bfloat16).astype(jnp.float32), b)
                for w, b in params]
    ref = fnn_reference(x, params_q)

    assert out.shape == (batch, dims[-1]), out.shape
    assert jnp.allclose(out, ref, atol=3e-2, rtol=3e-2), \
        float(jnp.max(jnp.abs(out - ref)))

    print("KERNEL_OK")
</pallas_src>

<mosaic_0001>
module attributes {stable_mosaic.version = 11 : i64} {
  func.func @_fnn_fused_kernel(%arg0: i32, %arg1: memref<8x256xbf16, #tpu.memory_space<vmem>>, %arg2: memref<256x256xbf16, #tpu.memory_space<vmem>>, %arg3: memref<1x256xf32, #tpu.memory_space<vmem>>, %arg4: memref<256x256xbf16, #tpu.memory_space<vmem>>, %arg5: memref<1x256xf32, #tpu.memory_space<vmem>>, %arg6: memref<256x256xbf16, #tpu.memory_space<vmem>>, %arg7: memref<1x256xf32, #tpu.memory_space<vmem>>, %arg8: memref<8x256xf32, #tpu.memory_space<vmem>>) attributes {dimension_semantics = [#tpu.dimension_semantics<parallel>], iteration_bounds = array<i64: 1>, scalar_prefetch = 0 : i64, scratch_operands = 0 : i64, tpu.core_type = #tpu.core_type<tc>, window_params = [{transform_indices = @transform_0, window_bounds = array<i64: 8, 256>}, {pipeline_mode = #tpu.pipeline_mode<synchronous>, transform_indices = @transform_1, window_bounds = array<i64: 256, 256>}, {pipeline_mode = #tpu.pipeline_mode<synchronous>, transform_indices = @transform_2, window_bounds = array<i64: 1, 256>}, {pipeline_mode = #tpu.pipeline_mode<synchronous>, transform_indices = @transform_3, window_bounds = array<i64: 256, 256>}, {pipeline_mode = #tpu.pipeline_mode<synchronous>, transform_indices = @transform_4, window_bounds = array<i64: 1, 256>}, {pipeline_mode = #tpu.pipeline_mode<synchronous>, transform_indices = @transform_5, window_bounds = array<i64: 256, 256>}, {pipeline_mode = #tpu.pipeline_mode<synchronous>, transform_indices = @transform_6, window_bounds = array<i64: 1, 256>}, {transform_indices = @transform_7, window_bounds = array<i64: 8, 256>}]} {
    %c0 = arith.constant 0 : index
    %c0_0 = arith.constant 0 : index
    %0 = vector.load %arg1[%c0, %c0_0] : memref<8x256xbf16, #tpu.memory_space<vmem>>, vector<8x256xbf16>
    %c0_1 = arith.constant 0 : index
    %c0_2 = arith.constant 0 : index
    %1 = vector.load %arg2[%c0_1, %c0_2] : memref<256x256xbf16, #tpu.memory_space<vmem>>, vector<256x256xbf16>
    %c0_3 = arith.constant 0 : index
    %c0_4 = arith.constant 0 : index
    %2 = vector.load %arg3[%c0_3, %c0_4] : memref<1x256xf32, #tpu.memory_space<vmem>>, vector<1x256xf32>
    %cst = arith.constant dense<0.000000e+00> : vector<8x256xf32>
    %3 = tpu.matmul %0, %1, %cst {dimension_numbers = #tpu.dot_dimension_numbers<[1], [0], [0], [1], [0, 0, 1, 1], [], []>} : vector<8x256xbf16>, vector<256x256xbf16>, vector<8x256xf32> -> vector<8x256xf32>
    %4 = vector.broadcast %2 : vector<1x256xf32> to vector<8x256xf32>
    %5 = arith.addf %3, %4 : vector<8x256xf32>
    %6 = arith.truncf %5 : vector<8x256xf32> to vector<8x256xbf16>
    %c0_5 = arith.constant 0 : index
    %c0_6 = arith.constant 0 : index
    %7 = vector.load %arg4[%c0_5, %c0_6] : memref<256x256xbf16, #tpu.memory_space<vmem>>, vector<256x256xbf16>
    %c0_7 = arith.constant 0 : index
    %c0_8 = arith.constant 0 : index
    %8 = vector.load %arg5[%c0_7, %c0_8] : memref<1x256xf32, #tpu.memory_space<vmem>>, vector<1x256xf32>
    %cst_9 = arith.constant dense<0.000000e+00> : vector<8x256xf32>
    %9 = tpu.matmul %6, %7, %cst_9 {dimension_numbers = #tpu.dot_dimension_numbers<[1], [0], [0], [1], [0, 0, 1, 1], [], []>} : vector<8x256xbf16>, vector<256x256xbf16>, vector<8x256xf32> -> vector<8x256xf32>
    %10 = vector.broadcast %8 : vector<1x256xf32> to vector<8x256xf32>
    %11 = arith.addf %9, %10 : vector<8x256xf32>
    %12 = arith.truncf %11 : vector<8x256xf32> to vector<8x256xbf16>
    %c0_10 = arith.constant 0 : index
    %c0_11 = arith.constant 0 : index
    %13 = vector.load %arg6[%c0_10, %c0_11] : memref<256x256xbf16, #tpu.memory_space<vmem>>, vector<256x256xbf16>
    %c0_12 = arith.constant 0 : index
    %c0_13 = arith.constant 0 : index
    %14 = vector.load %arg7[%c0_12, %c0_13] : memref<1x256xf32, #tpu.memory_space<vmem>>, vector<1x256xf32>
    %cst_14 = arith.constant dense<0.000000e+00> : vector<8x256xf32>
    %15 = tpu.matmul %12, %13, %cst_14 {dimension_numbers = #tpu.dot_dimension_numbers<[1], [0], [0], [1], [0, 0, 1, 1], [], []>} : vector<8x256xbf16>, vector<256x256xbf16>, vector<8x256xf32> -> vector<8x256xf32>
    %16 = vector.broadcast %14 : vector<1x256xf32> to vector<8x256xf32>
    %17 = arith.addf %15, %16 : vector<8x256xf32>
    %c0_15 = arith.constant 0 : index
    %c0_16 = arith.constant 0 : index
    %18 = vector.load %arg8[%c0_15, %c0_16] : memref<8x256xf32, #tpu.memory_space<vmem>>, vector<8x256xf32>
    tpu.vector_store %arg8[%c0_15, %c0_16], %17 {strides = array<i32>} : memref<8x256xf32, #tpu.memory_space<vmem>>, vector<8x256xf32>,
    return
  }
  func.func @transform_0(%arg0: i32) -> (i32, i32) {
    %c0_i32 = arith.constant 0 : i32
    %c0_i32_0 = arith.constant 0 : i32
    return %arg0, %c0_i32 : i32, i32
  }
  func.func @transform_1(%arg0: i32) -> (i32, i32) {
    %c0_i32 = arith.constant 0 : i32
    %c0_i32_0 = arith.constant 0 : i32
    %c0_i32_1 = arith.constant 0 : i32
    return %c0_i32, %c0_i32_0 : i32, i32
  }
  func.func @transform_2(%arg0: i32) -> (i32, i32) {
    %c0_i32 = arith.constant 0 : i32
    %c0_i32_0 = arith.constant 0 : i32
    %c0_i32_1 = arith.constant 0 : i32
    return %c0_i32, %c0_i32_0 : i32, i32
  }
  func.func @transform_3(%arg0: i32) -> (i32, i32) {
    %c0_i32 = arith.constant 0 : i32
    %c0_i32_0 = arith.constant 0 : i32
    %c0_i32_1 = arith.constant 0 : i32
    return %c0_i32, %c0_i32_0 : i32, i32
  }
  func.func @transform_4(%arg0: i32) -> (i32, i32) {
    %c0_i32 = arith.constant 0 : i32
    %c0_i32_0 = arith.constant 0 : i32
    %c0_i32_1 = arith.constant 0 : i32
    return %c0_i32, %c0_i32_0 : i32, i32
  }
  func.func @transform_5(%arg0: i32) -> (i32, i32) {
    %c0_i32 = arith.constant 0 : i32
    %c0_i32_0 = arith.constant 0 : i32
    %c0_i32_1 = arith.constant 0 : i32
    return %c0_i32, %c0_i32_0 : i32, i32
  }
  func.func @transform_6(%arg0: i32) -> (i32, i32) {
    %c0_i32 = arith.constant 0 : i32
    %c0_i32_0 = arith.constant 0 : i32
    %c0_i32_1 = arith.constant 0 : i32
    return %c0_i32, %c0_i32_0 : i32, i32
  }
  func.func @transform_7(%arg0: i32) -> (i32, i32) {
    %c0_i32 = arith.constant 0 : i32
    %c0_i32_0 = arith.constant 0 : i32
    return %arg0, %c0_i32 : i32, i32
  }
}

module attributes {stable_mosaic.version = 11 : i64} {
  func.func @_fnn_fused_kernel(%arg0: i32, %arg1: memref<8x256xbf16, #tpu.memory_space<vmem>>, %arg2: memref<256x256xbf16, #tpu.memory_space<vmem>>, %arg3: memref<1x256xf32, #tpu.memory_space<vmem>>, %arg4: memref<256x256xbf16, #tpu.memory_space<vmem>>, %arg5: memref<1x256xf32, #tpu.memory_space<vmem>>, %arg6: memref<256x256xbf16, #tpu.memory_space<vmem>>, %arg7: memref<1x256xf32, #tpu.memory_space<vmem>>, %arg8: memref<8x256xf32, #tpu.memory_space<vmem>>) attributes {dimension_semantics = [#tpu.dimension_semantics<parallel>], iteration_bounds = array<i64: 1>, scalar_prefetch = 0 : i64, scratch_operands = 0 : i64, tpu.core_type = #tpu.core_type<tc>, window_params = [{transform_indices = @transform_0, window_bounds = array<i64: 8, 256>}, {pipeline_mode = #tpu.pipeline_mode<synchronous>, transform_indices = @transform_1, window_bounds = array<i64: 256, 256>}, {pipeline_mode = #tpu.pipeline_mode<synchronous>, transform_indices = @transform_2, window_bounds = array<i64: 1, 256>}, {pipeline_mode = #tpu.pipeline_mode<synchronous>, transform_indices = @transform_3, window_bounds = array<i64: 256, 256>}, {pipeline_mode = #tpu.pipeline_mode<synchronous>, transform_indices = @transform_4, window_bounds = array<i64: 1, 256>}, {pipeline_mode = #tpu.pipeline_mode<synchronous>, transform_indices = @transform_5, window_bounds = array<i64: 256, 256>}, {pipeline_mode = #tpu.pipeline_mode<synchronous>, transform_indices = @transform_6, window_bounds = array<i64: 1, 256>}, {transform_indices = @transform_7, window_bounds = array<i64: 8, 256>}]} {
    %c0 = arith.constant 0 : index
    %c0_0 = arith.constant 0 : index
    %0 = vector.load %arg1[%c0, %c0_0] : memref<8x256xbf16, #tpu.memory_space<vmem>>, vector<8x256xbf16>
    %c0_1 = arith.constant 0 : index
    %c0_2 = arith.constant 0 : index
    %1 = vector.load %arg2[%c0_1, %c0_2] : memref<256x256xbf16, #tpu.memory_space<vmem>>, vector<256x256xbf16>
    %c0_3 = arith.constant 0 : index
    %c0_4 = arith.constant 0 : index
    %2 = vector.load %arg3[%c0_3, %c0_4] : memref<1x256xf32, #tpu.memory_space<vmem>>, vector<1x256xf32>
    %cst = arith.constant dense<0.000000e+00> : vector<8x256xf32>
    %3 = tpu.matmul %0, %1, %cst {dimension_numbers = #tpu.dot_dimension_numbers<[1], [0], [0], [1], [0, 0, 1, 1], [], []>} : vector<8x256xbf16>, vector<256x256xbf16>, vector<8x256xf32> -> vector<8x256xf32>
    %4 = vector.broadcast %2 : vector<1x256xf32> to vector<8x256xf32>
    %5 = arith.addf %3, %4 : vector<8x256xf32>
    %6 = arith.truncf %5 : vector<8x256xf32> to vector<8x256xbf16>
    %c0_5 = arith.constant 0 : index
    %c0_6 = arith.constant 0 : index
    %7 = vector.load %arg4[%c0_5, %c0_6] : memref<256x256xbf16, #tpu.memory_space<vmem>>, vector<256x256xbf16>
    %c0_7 = arith.constant 0 : index
    %c0_8 = arith.constant 0 : index
    %8 = vector.load %arg5[%c0_7, %c0_8] : memref<1x256xf32, #tpu.memory_space<vmem>>, vector<1x256xf32>
    %cst_9 = arith.constant dense<0.000000e+00> : vector<8x256xf32>
    %9 = tpu.matmul %6, %7, %cst_9 {dimension_numbers = #tpu.dot_dimension_numbers<[1], [0], [0], [1], [0, 0, 1, 1], [], []>} : vector<8x256xbf16>, vector<256x256xbf16>, vector<8x256xf32> -> vector<8x256xf32>
    %10 = vector.broadcast %8 : vector<1x256xf32> to vector<8x256xf32>
    %11 = arith.addf %9, %10 : vector<8x256xf32>
    %12 = arith.truncf %11 : vector<8x256xf32> to vector<8x256xbf16>
    %c0_10 = arith.constant 0 : index
    %c0_11 = arith.constant 0 : index
    %13 = vector.load %arg6[%c0_10, %c0_11] : memref<256x256xbf16, #tpu.memory_space<vmem>>, vector<256x256xbf16>
    %c0_12 = arith.constant 0 : index
    %c0_13 = arith.constant 0 : index
    %14 = vector.load %arg7[%c0_12, %c0_13] : memref<1x256xf32, #tpu.memory_space<vmem>>, vector<1x256xf32>
    %cst_14 = arith.constant dense<0.000000e+00> : vector<8x256xf32>
    %15 = tpu.matmul %12, %13, %cst_14 {dimension_numbers = #tpu.dot_dimension_numbers<[1], [0], [0], [1], [0, 0, 1, 1], [], []>} : vector<8x256xbf16>, vector<256x256xbf16>, vector<8x256xf32> -> vector<8x256xf32>
    %16 = vector.broadcast %14 : vector<1x256xf32> to vector<8x256xf32>
    %17 = arith.addf %15, %16 : vector<8x256xf32>
    %c0_15 = arith.constant 0 : index
    %c0_16 = arith.constant 0 : index
    %18 = vector.load %arg8[%c0_15, %c0_16] : memref<8x256xf32, #tpu.memory_space<vmem>>, vector<8x256xf32>
    tpu.vector_store %arg8[%c0_15, %c0_16], %17 {strides = array<i32>} : memref<8x256xf32, #tpu.memory_space<vmem>>, vector<8x256xf32>,
    return
  }
  func.func @transform_0(%arg0: i32) -> (i32, i32) {
    %c0_i32 = arith.constant 0 : i32
    %c0_i32_0 = arith.constant 0 : i32
    return %arg0, %c0_i32 : i32, i32
  }
  func.func @transform_1(%arg0: i32) -> (i32, i32) {
    %c0_i32 = arith.constant 0 : i32
    %c0_i32_0 = arith.constant 0 : i32
    %c0_i32_1 = arith.constant 0 : i32
    return %c0_i32, %c0_i32_0 : i32, i32
  }
  func.func @transform_2(%arg0: i32) -> (i32, i32) {
    %c0_i32 = arith.constant 0 : i32
    %c0_i32_0 = arith.constant 0 : i32
    %c0_i32_1 = arith.constant 0 : i32
    return %c0_i32, %c0_i32_0 : i32, i32
  }
  func.func @transform_3(%arg0: i32) -> (i32, i32) {
    %c0_i32 = arith.constant 0 : i32
    %c0_i32_0 = arith.constant 0 : i32
    %c0_i32_1 = arith.constant 0 : i32
    return %c0_i32, %c0_i32_0 : i32, i32
  }
  func.func @transform_4(%arg0: i32) -> (i32, i32) {
    %c0_i32 = arith.constant 0 : i32
    %c0_i32_0 = arith.constant 0 : i32
    %c0_i32_1 = arith.constant 0 : i32
    return %c0_i32, %c0_i32_0 : i32, i32
  }
  func.func @transform_5(%arg0: i32) -> (i32, i32) {
    %c0_i32 = arith.constant 0 : i32
    %c0_i32_0 = arith.constant 0 : i32
    %c0_i32_1 = arith.constant 0 : i32
    return %c0_i32, %c0_i32_0 : i32, i32
  }
  func.func @transform_6(%arg0: i32) -> (i32, i32) {
    %c0_i32 = arith.constant 0 : i32
    %c0_i32_0 = arith.constant 0 : i32
    %c0_i32_1 = arith.constant 0 : i32
    return %c0_i32, %c0_i32_0 : i32, i32
  }
  func.func @transform_7(%arg0: i32) -> (i32, i32) {
    %c0_i32 = arith.constant 0 : i32
    %c0_i32_0 = arith.constant 0 : i32
    return %arg0, %c0_i32 : i32, i32
  }
}

</mosaic_0001>

<bundles_post_ra>
// kernel: fnn_forward.1
= control target key start
LH: loop header
LB: loop body
LE: loop exit
PB: predicated region body
PF: predicated region fallthrough
CT: control target
= control target key end

     0   :  { %12 = vsyncpa [#allocation3], 0  ;;  %s1262_s0 = inlined_call_operand.vmem [shape: bf16[8,256], index: 0, kind: input, shape index: {}]   ;;  %s1263_s1 = inlined_call_operand.hbm [shape: bf16[256,256], index: 1, kind: input, shape index: {}]   ;;  %s1264_s2 = inlined_call_operand.vmem [shape: f32[1,256], index: 2, kind: input, shape index: {}]   ;;  %s1265_s3 = inlined_call_operand.hbm [shape: bf16[256,256], index: 3, kind: input, shape index: {}]   ;;  %s1266_s4 = inlined_call_operand.vmem [shape: f32[1,256], index: 4, kind: input, shape index: {}]   ;;  %s1267_s5 = inlined_call_operand.hbm [shape: bf16[256,256], index: 5, kind: input, shape index: {}]   ;;  %s1268_s6 = inlined_call_operand.vmem [shape: f32[1,256], index: 6, kind: input, shape index: {}]   ;;  %s1269_s7 = inlined_call_operand.vmem [shape: f32[8,256], index: 7, kind: output, shape index: {}]  }
   0x1   :  { %13 = vsyncpa [#allocation5], 0  ;;  %s1141_s24 = smov [#allocation4]   ;;  %s1142_s26 = smov [#allocation2]  }
   0x2   :  { %s35_s25 = sshll.u32 %s1141_s24, 4  ;;  %s21_s27 = sshll.u32 %s1142_s26, 4  ;;  %s36_s25 = int_to_ptr.vmem [resolvable:$true] %s35_s25  ;;  %s1186_s27 = int_to_ptr.vmem [resolvable:$true] %s21_s27 }
   0x3   :  { %s1071_s30 = scalar_lea.hbm %s1265_s3, 4096 }
   0x4   :  { %p1072_p0 = scmp.ne.s32.totalorder %s1265_s3, %s1071_s30  ;;  %p1075_p1 = scmp.lt.u32.totalorder %s1071_s30, %s1265_s3 }
   0x6   :  { %p1077_p2 = pnand %p1075_p1, %p1072_p0 }
   0x8   :  { %1080 = shalt.err (!%p1077_p2)
}
   0x9   :  { %s1081_s12 = scalar_lea.vmem %s36_s25, 4096  ;;  %p1086_p4 = scmp.lt.s32.totalorder %s36_s25, %s36_s25 }
   0xa   :  { %p1082_p3 = scmp.ne.s32.totalorder %s36_s25, %s1081_s12  ;;  %p1087_p5 = scmp.lt.s32.totalorder %s1081_s12, %s1081_s12 }
   0xc   :  { %p1088_p6 = por %p1087_p5, %p1086_p4 }
   0xe   :  { %p1089_p7 = pnand %p1088_p6, %p1082_p3 }
  0x10   :  { %1092 = shalt.err (!%p1089_p7)
}
  0x11   :  { %s1143_s13 = smov 128   ;;  %s1144_s14 = smov 8  }
  0x12   :  { %41 = dma.hbm_to_vmem [thread:$0]  %s1265_s3, 4096, %s36_s25, [#allocation5], %s1143_s13, %s1143_s13, %s1144_s14  }
  0x13   :  { %s1093_s19 = scalar_lea.hbm %s1263_s1, 4096 }
  0x14   :  { %p1094_p8 = scmp.ne.s32.totalorder %s1263_s1, %s1093_s19  ;;  %p1097_p9 = scmp.lt.u32.totalorder %s1093_s19, %s1263_s1 }
  0x16   :  { %p1099_p10 = pnand %p1097_p9, %p1094_p8 }
  0x18   :  { %1102 = shalt.err (!%p1099_p10)
}
  0x19   :  { %s1103_s24 = scalar_lea.vmem %s1186_s27, 4096  ;;  %p1108_p12 = scmp.lt.s32.totalorder %s1186_s27, %s1186_s27 }
  0x1a   :  { %p1104_p11 = scmp.ne.s32.totalorder %s1186_s27, %s1103_s24  ;;  %p1109_p13 = scmp.lt.s32.totalorder %s1103_s24, %s1103_s24 }
  0x1c   :  { %p1110_p0 = por %p1109_p13, %p1108_p12 }
  0x1e   :  { %p1111_p1 = pnand %p1110_p0, %p1104_p11 }
  0x20   :  { %1114 = shalt.err (!%p1111_p1)
}
  0x21   :  { %27 = dma.hbm_to_vmem [thread:$0]  %s1263_s1, 4096, %s1186_s27, [#allocation3], %s1143_s13, %s1143_s13, %s1144_s14  }
  0x22   :  { %s1145_s26 = smov [#allocation6]   ;;  %s1115_s8 = scalar_lea.hbm %s1267_s5, 4096 }
  0x23   :  { %s49_s28 = sshll.u32 %s1145_s26, 4  ;;  %p1116_p2 = scmp.ne.s32.totalorder %s1267_s5, %s1115_s8  ;;  %s50_s28 = int_to_ptr.vmem [resolvable:$true] %s49_s28 }
  0x24   :  { %p1119_p3 = scmp.lt.u32.totalorder %s1115_s8, %s1267_s5 }
  0x26   :  { %p1121_p4 = pnand %p1119_p3, %p1116_p2 }
  0x28   :  { %1124 = shalt.err (!%p1121_p4)
}
  0x29   :  { %s1125_s15 = scalar_lea.vmem %s50_s28, 4096  ;;  %p1130_p6 = scmp.lt.s32.totalorder %s50_s28, %s50_s28 }
  0x2a   :  { %p1126_p5 = scmp.ne.s32.totalorder %s50_s28, %s1125_s15  ;;  %p1131_p7 = scmp.lt.s32.totalorder %s1125_s15, %s1125_s15 }
  0x2c   :  { %p1132_p8 = por %p1131_p7, %p1130_p6 }
  0x2e   :  { %p1133_p9 = pnand %p1132_p8, %p1126_p5 }
  0x30   :  { %1136 = shalt.err (!%p1133_p9)
}
  0x31   :  { %55 = dma.hbm_to_vmem [thread:$0]  %s1267_s5, 4096, %s50_s28, [#allocation5], %s1143_s13, %s1143_s13, %s1144_s14  }
  0x32   :  { %1137 = dma.done.wait [#allocation3], 4096  }
  0x33   :  { %1138 = vsyncadd [#allocation3], 4294963200 }
  0x34   :  { %1139 = dma.done.wait [#allocation5], 8192  }
  0x35   :  { %1140 = vsyncadd [#allocation5], 4294959104  ;;  %v925_v0 = vld [vmem:[#allocation2 + $0x4] ss:$8 sps:$4 sm:$0xff]   ;;  %v927_v1 = vld [vmem:[#allocation2] ss:$8 sps:$4 sm:$0xff]  }
  0x36   :  { %279 = vmatprep.subr.bf16.mxu0 %v925_v0  ;;  %v928_v2 = vld [vmem:[#allocation2 + $0x14] ss:$8 sps:$4 sm:$0xff]   ;;  %v930_v3 = vld [vmem:[#allocation2 + $0x10] ss:$8 sps:$4 sm:$0xff]   ;;  %v931_v4 = vld [vmem:[#allocation2 + $0x24] ss:$8 sps:$4 sm:$0xff]  }
  0x37   :  { %280 = vmatpush1.bf16.msra.mxu0 %v927_v1  ;;  %v933_v5 = vld [vmem:[#allocation2 + $0x20] ss:$8 sps:$4 sm:$0xff]   ;;  %v934_v6 = vld [vmem:[#allocation2 + $0x34] ss:$8 sps:$4 sm:$0xff]   ;;  %v936_v7 = vld [vmem:[#allocation2 + $0x30] ss:$8 sps:$4 sm:$0xff]  }
  0x38   :  { %281 = vmatprep.subr.bf16.mxu0 %v928_v2  ;;  %v937_v8 = vld [vmem:[#allocation2 + $0x44] ss:$8 sps:$4 sm:$0xff]   ;;  %v939_v9 = vld [vmem:[#allocation2 + $0x40] ss:$8 sps:$4 sm:$0xff]   ;;  %v940_v10 = vld [vmem:[#allocation2 + $0x54] ss:$8 sps:$4 sm:$0xff]  }
  0x39   :  { %v942_v11 = vld [vmem:[#allocation2 + $0x50] ss:$8 sps:$4 sm:$0xff]   ;;  %v943_v12 = vld [vmem:[#allocation2 + $0x64] ss:$8 sps:$4 sm:$0xff]   ;;  %v945_v13 = vld [vmem:[#allocation2 + $0x60] ss:$8 sps:$4 sm:$0xff]  }
  0x3a   :  { %v1241_v14 = vld [vmem:[%s1262_s0] sm:$0xff]  ;;  %v978_v18 = vld [vmem:[#allocation4 + $0x14] ss:$8 sps:$4 sm:$0xff]   ;;  %v948_v20 = vld [vmem:[#allocation2 + $0x70] ss:$8 sps:$4 sm:$0xff]  }
  0x3b   :  { %282 = vmatpush1.bf16.msra.mxu0 %v930_v3  ;;  %v823_v15 = vcombine.high %v1241_v14, %v1241_v14  ;;  %v975_v16 = vld [vmem:[#allocation4 + $0x4] ss:$8 sps:$4 sm:$0xff]   ;;  %v977_v17 = vld [vmem:[#allocation4] ss:$8 sps:$4 sm:$0xff]   ;;  %v946_v19 = vld [vmem:[#allocation2 + $0x74] ss:$8 sps:$4 sm:$0xff]   ;;  %v822_v55 = vcombine.low %v1241_v14, %v1241_v14 }
  0x3c   :  { %283 = vmatprep.subr.bf16.mxu0 %v931_v4  ;;  %526 = vmatprep.subr.bf16.mxu1 %v975_v16  ;;  %v980_v21 = vld [vmem:[#allocation4 + $0x10] ss:$8 sps:$4 sm:$0xff]   ;;  %v981_v22 = vld [vmem:[#allocation4 + $0x24] ss:$8 sps:$4 sm:$0xff]   ;;  %v951_v24 = vld [vmem:[#allocation2 + $0x80] ss:$8 sps:$4 sm:$0xff]  }
  0x3d   :  { %311 = vmatprep.mubr.bf16.mxu0 %v823_v15  ;;  %527 = vmatpush1.bf16.msra.mxu1 %v977_v17  ;;  %v949_v23 = vld [vmem:[#allocation2 + $0x84] ss:$8 sps:$4 sm:$0xff]   ;;  %v983_v25 = vld [vmem:[#allocation4 + $0x20] ss:$8 sps:$4 sm:$0xff]   ;;  %v984_v26 = vld [vmem:[#allocation4 + $0x34] ss:$8 sps:$4 sm:$0xff]  }
  0x3e   :  { %528 = vmatprep.subr.bf16.mxu1 %v978_v18  ;;  %v952_v27 = vld [vmem:[#allocation2 + $0x94] ss:$8 sps:$4 sm:$0xff]   ;;  %v954_v28 = vld [vmem:[#allocation2 + $0x90] ss:$8 sps:$4 sm:$0xff]   ;;  %v987_v30 = vld [vmem:[#allocation4 + $0x44] ss:$8 sps:$4 sm:$0xff]  }
  0x3f   :  { %284 = vmatpush1.bf16.msra.mxu0 %v933_v5  ;;  %v986_v29 = vld [vmem:[#allocation4 + $0x30] ss:$8 sps:$4 sm:$0xff]   ;;  %v955_v31 = vld [vmem:[#allocation2 + $0xa4] ss:$8 sps:$4 sm:$0xff]   ;;  %v957_v32 = vld [vmem:[#allocation2 + $0xa0] ss:$8 sps:$4 sm:$0xff]  }
  0x40   :  { %285 = vmatprep.subr.bf16.mxu0 %v934_v6  ;;  %v989_v33 = vld [vmem:[#allocation4 + $0x40] ss:$8 sps:$4 sm:$0xff]   ;;  %v990_v34 = vld [vmem:[#allocation4 + $0x54] ss:$8 sps:$4 sm:$0xff]   ;;  %v960_v36 = vld [vmem:[#allocation2 + $0xb0] ss:$8 sps:$4 sm:$0xff]  }
  0x41   :  { %529 = vmatpush1.bf16.msra.mxu1 %v980_v21  ;;  %v958_v35 = vld [vmem:[#allocation2 + $0xb4] ss:$8 sps:$4 sm:$0xff]   ;;  %v992_v37 = vld [vmem:[#allocation4 + $0x50] ss:$8 sps:$4 sm:$0xff]   ;;  %v993_v38 = vld [vmem:[#allocation4 + $0x64] ss:$8 sps:$4 sm:$0xff]  }
  0x42   :  { %530 = vmatprep.subr.bf16.mxu1 %v981_v22  ;;  %v961_v39 = vld [vmem:[#allocation2 + $0xc4] ss:$8 sps:$4 sm:$0xff]   ;;  %v995_v40 = vld [vmem:[#allocation4 + $0x60] ss:$8 sps:$4 sm:$0xff]   ;;  %v996_v42 = vld [vmem:[#allocation4 + $0x74] ss:$8 sps:$4 sm:$0xff]  }
  0x43   :  { %286 = vmatpush1.bf16.msra.mxu0 %v936_v7  ;;  %v963_v41 = vld [vmem:[#allocation2 + $0xc0] ss:$8 sps:$4 sm:$0xff]   ;;  %v964_v43 = vld [vmem:[#allocation2 + $0xd4] ss:$8 sps:$4 sm:$0xff]   ;;  %v998_v44 = vld [vmem:[#allocation4 + $0x70] ss:$8 sps:$4 sm:$0xff]  }
  0x44   :  { %287 = vmatprep.subr.bf16.mxu0 %v937_v8  ;;  %v966_v45 = vld [vmem:[#allocation2 + $0xd0] ss:$8 sps:$4 sm:$0xff]   ;;  %v999_v46 = vld [vmem:[#allocation4 + $0x84] ss:$8 sps:$4 sm:$0xff]   ;;  %v1001_v48 = vld [vmem:[#allocation4 + $0x80] ss:$8 sps:$4 sm:$0xff]  }
  0x45   :  { %531 = vmatpush1.bf16.msra.mxu1 %v983_v25  ;;  %v967_v47 = vld [vmem:[#allocation2 + $0xe4] ss:$8 sps:$4 sm:$0xff]   ;;  %v969_v49 = vld [vmem:[#allocation2 + $0xe0] ss:$8 sps:$4 sm:$0xff]   ;;  %v1002_v50 = vld [vmem:[#allocation4 + $0x94] ss:$8 sps:$4 sm:$0xff]  }
  0x46   :  { %532 = vmatprep.subr.bf16.mxu1 %v984_v26  ;;  %v970_v51 = vld [vmem:[#allocation2 + $0xf4] ss:$8 sps:$4 sm:$0xff]   ;;  %v1004_v52 = vld [vmem:[#allocation4 + $0x90] ss:$8 sps:$4 sm:$0xff]   ;;  %v1005_v54 = vld [vmem:[#allocation4 + $0xa4] ss:$8 sps:$4 sm:$0xff]  }
  0x47   :  { %288 = vmatpush1.bf16.msra.mxu0 %v939_v9  ;;  %v972_v53 = vld [vmem:[#allocation2 + $0xf0] ss:$8 sps:$4 sm:$0xff]   ;;  %v1007_v56 = vld [vmem:[#allocation4 + $0xa0] ss:$8 sps:$4 sm:$0xff]   ;;  %v1008_v57 = vld [vmem:[#allocation4 + $0xb4] ss:$8 sps:$4 sm:$0xff]  }
  0x48   :  { %289 = vmatprep.subr.bf16.mxu0 %v940_v10  ;;  %v1010_v58 = vld [vmem:[#allocation4 + $0xb0] ss:$8 sps:$4 sm:$0xff]   ;;  %v1011_v59 = vld [vmem:[#allocation4 + $0xc4] ss:$8 sps:$4 sm:$0xff]   ;;  %v1013_v60 = vld [vmem:[#allocation4 + $0xc0] ss:$8 sps:$4 sm:$0xff]  }
  0x49   :  { %533 = vmatpush1.bf16.msra.mxu1 %v986_v29  ;;  %v1014_v61 = vld [vmem:[#allocation4 + $0xd4] ss:$8 sps:$4 sm:$0xff]   ;;  %v1016_v62 = vld [vmem:[#allocation4 + $0xd0] ss:$8 sps:$4 sm:$0xff]   ;;  %v1017_v63 = vld [vmem:[#allocation4 + $0xe4] ss:$8 sps:$4 sm:$0xff]  }
  0x4a   :  { %534 = vmatprep.subr.bf16.mxu1 %v987_v30  ;;  %v1019_v0 = vld [vmem:[#allocation4 + $0xe0] ss:$8 sps:$4 sm:$0xff]   ;;  %v1020_v1 = vld [vmem:[#allocation4 + $0xf4] ss:$8 sps:$4 sm:$0xff]   ;;  %v1022_v2 = vld [vmem:[#allocation4 + $0xf0] ss:$8 sps:$4 sm:$0xff]  }
  0x4b   :  { %290 = vmatpush1.bf16.msra.mxu0 %v942_v11  ;;  %v1023_v3 = vld [vmem:[#allocation6] ss:$8 sps:$4 sm:$0xff]   ;;  %v1025_v4 = vld [vmem:[#allocation6 + $0x4] ss:$8 sps:$4 sm:$0xff]   ;;  %v1028_v5 = vld [vmem:[#allocation6 + $0x14] ss:$8 sps:$4 sm:$0xff]  }
  0x4c   :  { %291 = vmatprep.subr.bf16.mxu0 %v943_v12  ;;  %v1026_v6 = vld [vmem:[#allocation6 + $0x10] ss:$8 sps:$4 sm:$0xff]   ;;  %v1031_v7 = vld [vmem:[#allocation6 + $0x24] ss:$8 sps:$4 sm:$0xff]   ;;  %v1029_v8 = vld [vmem:[#allocation6 + $0x20] ss:$8 sps:$4 sm:$0xff]  }
  0x4d   :  { %535 = vmatpush1.bf16.msra.mxu1 %v989_v33  ;;  %v1034_v9 = vld [vmem:[#allocation6 + $0x34] ss:$8 sps:$4 sm:$0xff]   ;;  %v1032_v10 = vld [vmem:[#allocation6 + $0x30] ss:$8 sps:$4 sm:$0xff]   ;;  %v1037_v11 = vld [vmem:[#allocation6 + $0x44] ss:$8 sps:$4 sm:$0xff]   ;;  %v102_v33 = vlaneseq }
  0x4e   :  { %536 = vmatprep.subr.bf16.mxu1 %v990_v34  ;;  %v1035_v12 = vld [vmem:[#allocation6 + $0x40] ss:$8 sps:$4 sm:$0xff]   ;;  %v1038_v14 = vld [vmem:[#allocation6 + $0x50] ss:$8 sps:$4 sm:$0xff]   ;;  %v1043_v15 = vld [vmem:[#allocation6 + $0x64] ss:$8 sps:$4 sm:$0xff]  }
  0x4f   :  { %292 = vmatpush1.bf16.msra.mxu0 %v945_v13  ;;  %v1040_v13 = vld [vmem:[#allocation6 + $0x54] ss:$8 sps:$4 sm:$0xff]   ;;  %v1041_v16 = vld [vmem:[#allocation6 + $0x60] ss:$8 sps:$4 sm:$0xff]   ;;  %v1044_v18 = vld [vmem:[#allocation6 + $0x70] ss:$8 sps:$4 sm:$0xff]  }
  0x50   :  { %293 = vmatprep.subr.bf16.mxu0 %v946_v19  ;;  %v1046_v17 = vld [vmem:[#allocation6 + $0x74] ss:$8 sps:$4 sm:$0xff]   ;;  %v1049_v19 = vld [vmem:[#allocation6 + $0x84] ss:$8 sps:$4 sm:$0xff]   ;;  %v1050_v22 = vld [vmem:[#allocation6 + $0x90] ss:$8 sps:$4 sm:$0xff]  }
  0x51   :  { %537 = vmatpush1.bf16.msra.mxu1 %v992_v37  ;;  %v1052_v21 = vld [vmem:[#allocation6 + $0x94] ss:$8 sps:$4 sm:$0xff]   ;;  %v1056_v26 = vld [vmem:[#allocation6 + $0xb0] ss:$8 sps:$4 sm:$0xff]   ;;  %v103_v34 = vshrl.u32 %v102_v33, 7 }
  0x52   :  { %538 = vmatprep.subr.bf16.mxu1 %v993_v38  ;;  %v1058_v25 = vld [vmem:[#allocation6 + $0xb4] ss:$8 sps:$4 sm:$0xff]   ;;  %v1062_v30 = vld [vmem:[#allocation6 + $0xd0] ss:$8 sps:$4 sm:$0xff]  }
  0x53   :  { %294 = vmatpush1.bf16.msra.mxu0 %v948_v20  ;;  %v1047_v20 = vld [vmem:[#allocation6 + $0x80] ss:$8 sps:$4 sm:$0xff]   ;;  %v1064_v29 = vld [vmem:[#allocation6 + $0xd4] ss:$8 sps:$4 sm:$0xff]   ;;  %v108_v37 = vsub.s32 1, %v103_v34 }
  0x54   :  { %295 = vmatprep.subr.bf16.mxu0 %v949_v23  ;;  %v1055_v23 = vld [vmem:[#allocation6 + $0xa4] ss:$8 sps:$4 sm:$0xff]  }
  0x55   :  { %539 = vmatpush1.bf16.msra.mxu1 %v995_v40 }
  0x56   :  { %540 = vmatprep.subr.bf16.mxu1 %v996_v42 }
  0x57   :  { %296 = vmatpush1.bf16.msra.mxu0 %v951_v24  ;;  %v1053_v24 = vld [vmem:[#allocation6 + $0xa0] ss:$8 sps:$4 sm:$0xff]  }
  0x58   :  { %297 = vmatprep.subr.bf16.mxu0 %v952_v27  ;;  %v1061_v27 = vld [vmem:[#allocation6 + $0xc4] ss:$8 sps:$4 sm:$0xff]  }
  0x59   :  { %541 = vmatpush1.bf16.msra.mxu1 %v998_v44 }
  0x5a   :  { %542 = vmatprep.subr.bf16.mxu1 %v999_v46 }
  0x5b   :  { %298 = vmatpush1.bf16.msra.mxu0 %v954_v28  ;;  %v1059_v28 = vld [vmem:[#allocation6 + $0xc0] ss:$8 sps:$4 sm:$0xff]  }
  0x5c   :  { %299 = vmatprep.subr.bf16.mxu0 %v955_v31  ;;  %v1067_v31 = vld [vmem:[#allocation6 + $0xe4] ss:$8 sps:$4 sm:$0xff]  }
  0x5d   :  { %543 = vmatpush1.bf16.msra.mxu1 %v1001_v48  ;;  %v1070_v48 = vld [vmem:[#allocation6 + $0xf4] ss:$8 sps:$4 sm:$0xff]  }
  0x5e   :  { %544 = vmatprep.subr.bf16.mxu1 %v1002_v50  ;;  %v354_v50 = vld [vmem:[%s1266_s4] sm:$0x3] }
  0x5f   :  { %300 = vmatpush1.bf16.msra.mxu0 %v957_v32  ;;  %v1065_v32 = vld [vmem:[#allocation6 + $0xe0] ss:$8 sps:$4 sm:$0xff]  }
  0x60   :  { %301 = vmatprep.subr.bf16.mxu0 %v958_v35  ;;  %v104_v35 = vsub.s32 0, %v103_v34 }
  0x61   :  { %545 = vmatpush1.bf16.msra.mxu1 %v1004_v52  ;;  %v363_v52 = vrot.slane %v354_v50, %v108_v37 }
  0x62   :  { %546 = vmatprep.subr.bf16.mxu1 %v1005_v54 }
  0x63   :  { %302 = vmatpush1.bf16.msra.mxu0 %v960_v36  ;;  %v100_v36 = vld [vmem:[%s1264_s2] sm:$0x3] }
  0x64   :  { %303 = vmatprep.subr.bf16.mxu0 %v961_v39  ;;  %v105_v38 = vrot.slane %v100_v36, %v104_v35  ;;  %v109_v39 = vrot.slane %v100_v36, %v108_v37 }
  0x65   :  { %547 = vmatpush1.bf16.msra.mxu1 %v1007_v56 }
  0x66   :  { %548 = vmatprep.subr.bf16.mxu1 %v1008_v57 }
  0x67   :  { %304 = vmatpush1.bf16.msra.mxu0 %v963_v41 }
  0x68   :  { %305 = vmatprep.subr.bf16.mxu0 %v964_v43 }
  0x69   :  { %549 = vmatpush1.bf16.msra.mxu1 %v1010_v58 }
  0x6a   :  { %550 = vmatprep.subr.bf16.mxu1 %v1011_v59 }
  0x6b   :  { %306 = vmatpush1.bf16.msra.mxu0 %v966_v45 }
  0x6c   :  { %307 = vmatprep.subr.bf16.mxu0 %v967_v47 }
  0x6d   :  { %551 = vmatpush1.bf16.msra.mxu1 %v1013_v60 }
  0x6e   :  { %552 = vmatprep.subr.bf16.mxu1 %v1014_v61  ;;  %v601_v61 = vld [vmem:[%s1268_s6] sm:$0x3] }
  0x6f   :  { %308 = vmatpush1.bf16.msra.mxu0 %v969_v49  ;;  %v1068_v49 = vld [vmem:[#allocation6 + $0xf0] ss:$8 sps:$4 sm:$0xff]  }
  0x70   :  { %309 = vmatprep.subr.bf16.mxu0 %v970_v51  ;;  %v359_v51 = vrot.slane %v354_v50, %v104_v35 }
  0x71   :  { %553 = vmatpush1.bf16.msra.mxu1 %v1016_v62  ;;  %v606_v62 = vrot.slane %v601_v61, %v104_v35 }
  0x72   :  { %554 = vmatprep.subr.bf16.mxu1 %v1017_v63  ;;  %v610_v63 = vrot.slane %v601_v61, %v108_v37 }
  0x73   :  { %310 = vmatpush1.bf16.msra.mxu0 %v972_v53 }
  0x74   :  { %773 = vmatprep.subr.bf16.mxu0 %v1025_v4 }
  0x75   :  { %555 = vmatpush1.bf16.msra.mxu1 %v1019_v0 }
  0x76   :  { %312 = vmatmul.mubr.bf16.vlgmr.msra.gmra.mrb[0].mxu0 %v822_v55  ;;  %556 = vmatprep.subr.bf16.mxu1 %v1020_v1 }
  0x77   :  { %774 = vmatpush1.bf16.msra.mxu0 %v1023_v3 }
  0x78   :  { %775 = vmatprep.subr.bf16.mxu0 %v1028_v5 }
  0x79   :  { %557 = vmatpush1.bf16.msra.mxu1 %v1022_v2 }
  0x7b   :  { %776 = vmatpush1.bf16.msra.mxu0 %v1026_v6 }
  0x7c   :  { %777 = vmatprep.subr.bf16.mxu0 %v1031_v7 }
  0x7f   :  { %778 = vmatpush1.bf16.msra.mxu0 %v1029_v8 }
  0x80   :  { %779 = vmatprep.subr.bf16.mxu0 %v1034_v9 }
  0x83   :  { %780 = vmatpush1.bf16.msra.mxu0 %v1032_v10 }
  0x84   :  { %781 = vmatprep.subr.bf16.mxu0 %v1037_v11 }
  0x87   :  { %782 = vmatpush1.bf16.msra.mxu0 %v1035_v12 }
  0x88   :  { %783 = vmatprep.subr.bf16.mxu0 %v1040_v13 }
  0x8b   :  { %784 = vmatpush1.bf16.msra.mxu0 %v1038_v14 }
  0x8c   :  { %785 = vmatprep.subr.bf16.mxu0 %v1043_v15 }
  0x8f   :  { %786 = vmatpush1.bf16.msra.mxu0 %v1041_v16 }
  0x90   :  { %787 = vmatprep.subr.bf16.mxu0 %v1046_v17 }
  0x93   :  { %788 = vmatpush1.bf16.msra.mxu0 %v1044_v18 }
  0x94   :  { %789 = vmatprep.subr.bf16.mxu0 %v1049_v19 }
  0x97   :  { %790 = vmatpush1.bf16.msra.mxu0 %v1047_v20 }
  0x98   :  { %791 = vmatprep.subr.bf16.mxu0 %v1052_v21 }
  0x9b   :  { %792 = vmatpush1.bf16.msra.mxu0 %v1050_v22 }
  0x9c   :  { %793 = vmatprep.subr.bf16.mxu0 %v1055_v23 }
  0x9f   :  { %794 = vmatpush1.bf16.msra.mxu0 %v1053_v24 }
  0xa0   :  { %795 = vmatprep.subr.bf16.mxu0 %v1058_v25 }
  0xa3   :  { %796 = vmatpush1.bf16.msra.mxu0 %v1056_v26 }
  0xa4   :  { %797 = vmatprep.subr.bf16.mxu0 %v1061_v27 }
  0xa7   :  { %798 = vmatpush1.bf16.msra.mxu0 %v1059_v28 }
  0xa8   :  { %799 = vmatprep.subr.bf16.mxu0 %v1064_v29 }
  0xab   :  { %800 = vmatpush1.bf16.msra.mxu0 %v1062_v30 }
  0xac   :  { %801 = vmatprep.subr.bf16.mxu0 %v1067_v31 }
  0xaf   :  { %802 = vmatpush1.bf16.msra.mxu0 %v1065_v32 }
  0xb0   :  { %803 = vmatprep.subr.bf16.mxu0 %v1070_v48 }
  0xb3   :  { %804 = vmatpush1.bf16.msra.mxu0 %v1068_v49 }
 0x149   :  { %v313_v40 = vpop.f32.mrb[0].mxu0 }
 0x14a   :  { %v314_v41 = vadd.f32 %v313_v40, %v105_v38  ;;  %v315_v42 = vpop.f32.mrb[1].mxu0 }
 0x14b   :  { %v317_v43 = vpop.f32.mrb[2].mxu0  ;;  %v316_v44 = vadd.f32 %v315_v42, %v109_v39 }
 0x14c   :  { %v318_v45 = vpop.f32.mrb[3].mxu0  ;;  %v320_v47 = vpack.c.bf16 %v314_v41, %v314_v41 }
 0x14d   :  { %v321_v46 = vpack.c.bf16 %v316_v44, %v316_v44 }
 0x14f   :  { %558 = vmatprep.mubr.bf16.mxu1 %v321_v46 }
 0x150   :  { %559 = vmatmul.mubr.bf16.vlgmr.msra.gmra.mrb[0].mxu1 %v320_v47 }
 0x223   :  { %v560_v53 = vpop.f32.mrb[0].mxu1 }
 0x224   :  { %v561_v54 = vadd.f32 %v560_v53, %v359_v51  ;;  %v562_v55 = vpop.f32.mrb[1].mxu1 }
 0x225   :  { %v563_v56 = vadd.f32 %v562_v55, %v363_v52  ;;  %v564_v57 = vpop.f32.mrb[2].mxu1 }
 0x226   :  { %v565_v58 = vpop.f32.mrb[3].mxu1  ;;  %v567_v60 = vpack.c.bf16 %v561_v54, %v561_v54 }
 0x227   :  { %v568_v59 = vpack.c.bf16 %v563_v56, %v563_v56 }
 0x229   :  { %805 = vmatprep.mubr.bf16.mxu0 %v568_v59 }
 0x22a   :  { %806 = vmatmul.mubr.bf16.vlgmr.msra.gmra.mrb[4].mxu0 %v567_v60 }
 0x2fd   :  { %v807_v0 = vpop.f32.mrb[4].mxu0 }
 0x2fe   :  { %v808_v1 = vadd.f32 %v807_v0, %v606_v62  ;;  %v809_v2 = vpop.f32.mrb[5].mxu0 }
 0x2ff   :  { %v810_v3 = vadd.f32 %v809_v2, %v610_v63  ;;  %v811_v4 = vpop.f32.mrb[6].mxu0 }
 0x300   :  { %814 = vst [vmem:[%s1269_s7] sm:$0xff] %v808_v1  ;;  %v812_v5 = vpop.f32.mrb[7].mxu0 }
 0x301   :  { %815 = vst [vmem:[%s1269_s7 + $0x8] sm:$0xff] %v810_v3 }
 0x302   :  { %820 = vsyncpa [#allocation3], 1 }
 0x303   :  { %821 = vsyncpa [#allocation5], 1 }

// kernel: fnn_forward.1
= control target key start
LH: loop header
LB: loop body
LE: loop exit
PB: predicated region body
PF: predicated region fallthrough
CT: control target
= control target key end

     0   :  { %12 = vsyncpa [#allocation3], 0  ;;  %s1262_s0 = inlined_call_operand.vmem [shape: bf16[8,256], index: 0, kind: input, shape index: {}]   ;;  %s1263_s1 = inlined_call_operand.hbm [shape: bf16[256,256], index: 1, kind: input, shape index: {}]   ;;  %s1264_s2 = inlined_call_operand.vmem [shape: f32[1,256], index: 2, kind: input, shape index: {}]   ;;  %s1265_s3 = inlined_call_operand.hbm [shape: bf16[256,256], index: 3, kind: input, shape index: {}]   ;;  %s1266_s4 = inlined_call_operand.vmem [shape: f32[1,256], index: 4, kind: input, shape index: {}]   ;;  %s1267_s5 = inlined_call_operand.hbm [shape: bf16[256,256], index: 5, kind: input, shape index: {}]   ;;  %s1268_s6 = inlined_call_operand.vmem [shape: f32[1,256], index: 6, kind: input, shape index: {}]   ;;  %s1269_s7 = inlined_call_operand.vmem [shape: f32[8,256], index: 7, kind: output, shape index: {}]  }
   0x1   :  { %13 = vsyncpa [#allocation5], 0  ;;  %s1141_s24 = smov [#allocation4]   ;;  %s1142_s26 = smov [#allocation2]  }
   0x2   :  { %s35_s25 = sshll.u32 %s1141_s24, 4  ;;  %s21_s27 = sshll.u32 %s1142_s26, 4  ;;  %s36_s25 = int_to_ptr.vmem [resolvable:$true] %s35_s25  ;;  %s1186_s27 = int_to_ptr.vmem [resolvable:$true] %s21_s27 }
   0x3   :  { %s1071_s30 = scalar_lea.hbm %s1265_s3, 4096 }
   0x4   :  { %p1072_p0 = scmp.ne.s32.totalorder %s1265_s3, %s1071_s30  ;;  %p1075_p1 = scmp.lt.u32.totalorder %s1071_s30, %s1265_s3 }
   0x6   :  { %p1077_p2 = pnand %p1075_p1, %p1072_p0 }
   0x8   :  { %1080 = shalt.err (!%p1077_p2)
}
   0x9   :  { %s1081_s12 = scalar_lea.vmem %s36_s25, 4096  ;;  %p1086_p4 = scmp.lt.s32.totalorder %s36_s25, %s36_s25 }
   0xa   :  { %p1082_p3 = scmp.ne.s32.totalorder %s36_s25, %s1081_s12  ;;  %p1087_p5 = scmp.lt.s32.totalorder %s1081_s12, %s1081_s12 }
   0xc   :  { %p1088_p6 = por %p1087_p5, %p1086_p4 }
   0xe   :  { %p1089_p7 = pnand %p1088_p6, %p1082_p3 }
  0x10   :  { %1092 = shalt.err (!%p1089_p7)
}
  0x11   :  { %s1143_s13 = smov 128   ;;  %s1144_s14 = smov 8  }
  0x12   :  { %41 = dma.hbm_to_vmem [thread:$0]  %s1265_s3, 4096, %s36_s25, [#allocation5], %s1143_s13, %s1143_s13, %s1144_s14  }
  0x13   :  { %s1093_s19 = scalar_lea.hbm %s1263_s1, 4096 }
  0x14   :  { %p1094_p8 = scmp.ne.s32.totalorder %s1263_s1, %s1093_s19  ;;  %p1097_p9 = scmp.lt.u32.totalorder %s1093_s19, %s1263_s1 }
  0x16   :  { %p1099_p10 = pnand %p1097_p9, %p1094_p8 }
  0x18   :  { %1102 = shalt.err (!%p1099_p10)
}
  0x19   :  { %s1103_s24 = scalar_lea.vmem %s1186_s27, 4096  ;;  %p1108_p12 = scmp.lt.s32.totalorder %s1186_s27, %s1186_s27 }
  0x1a   :  { %p1104_p11 = scmp.ne.s32.totalorder %s1186_s27, %s1103_s24  ;;  %p1109_p13 = scmp.lt.s32.totalorder %s1103_s24, %s1103_s24 }
  0x1c   :  { %p1110_p0 = por %p1109_p13, %p1108_p12 }
  0x1e   :  { %p1111_p1 = pnand %p1110_p0, %p1104_p11 }
  0x20   :  { %1114 = shalt.err (!%p1111_p1)
}
  0x21   :  { %27 = dma.hbm_to_vmem [thread:$0]  %s1263_s1, 4096, %s1186_s27, [#allocation3], %s1143_s13, %s1143_s13, %s1144_s14  }
  0x22   :  { %s1145_s26 = smov [#allocation6]   ;;  %s1115_s8 = scalar_lea.hbm %s1267_s5, 4096 }
  0x23   :  { %s49_s28 = sshll.u32 %s1145_s26, 4  ;;  %p1116_p2 = scmp.ne.s32.totalorder %s1267_s5, %s1115_s8  ;;  %s50_s28 = int_to_ptr.vmem [resolvable:$true] %s49_s28 }
  0x24   :  { %p1119_p3 = scmp.lt.u32.totalorder %s1115_s8, %s1267_s5 }
  0x26   :  { %p1121_p4 = pnand %p1119_p3, %p1116_p2 }
  0x28   :  { %1124 = shalt.err (!%p1121_p4)
}
  0x29   :  { %s1125_s15 = scalar_lea.vmem %s50_s28, 4096  ;;  %p1130_p6 = scmp.lt.s32.totalorder %s50_s28, %s50_s28 }
  0x2a   :  { %p1126_p5 = scmp.ne.s32.totalorder %s50_s28, %s1125_s15  ;;  %p1131_p7 = scmp.lt.s32.totalorder %s1125_s15, %s1125_s15 }
  0x2c   :  { %p1132_p8 = por %p1131_p7, %p1130_p6 }
  0x2e   :  { %p1133_p9 = pnand %p1132_p8, %p1126_p5 }
  0x30   :  { %1136 = shalt.err (!%p1133_p9)
}
  0x31   :  { %55 = dma.hbm_to_vmem [thread:$0]  %s1267_s5, 4096, %s50_s28, [#allocation5], %s1143_s13, %s1143_s13, %s1144_s14  }
  0x32   :  { %1137 = dma.done.wait [#allocation3], 4096  }
  0x33   :  { %1138 = vsyncadd [#allocation3], 4294963200 }
  0x34   :  { %1139 = dma.done.wait [#allocation5], 8192  }
  0x35   :  { %1140 = vsyncadd [#allocation5], 4294959104  ;;  %v925_v0 = vld [vmem:[#allocation2 + $0x4] ss:$8 sps:$4 sm:$0xff]   ;;  %v927_v1 = vld [vmem:[#allocation2] ss:$8 sps:$4 sm:$0xff]  }
  0x36   :  { %279 = vmatprep.subr.bf16.mxu0 %v925_v0  ;;  %v928_v2 = vld [vmem:[#allocation2 + $0x14] ss:$8 sps:$4 sm:$0xff]   ;;  %v930_v3 = vld [vmem:[#allocation2 + $0x10] ss:$8 sps:$4 sm:$0xff]   ;;  %v931_v4 = vld [vmem:[#allocation2 + $0x24] ss:$8 sps:$4 sm:$0xff]  }
  0x37   :  { %280 = vmatpush1.bf16.msra.mxu0 %v927_v1  ;;  %v933_v5 = vld [vmem:[#allocation2 + $0x20] ss:$8 sps:$4 sm:$0xff]   ;;  %v934_v6 = vld [vmem:[#allocation2 + $0x34] ss:$8 sps:$4 sm:$0xff]   ;;  %v936_v7 = vld [vmem:[#allocation2 + $0x30] ss:$8 sps:$4 sm:$0xff]  }
  0x38   :  { %281 = vmatprep.subr.bf16.mxu0 %v928_v2  ;;  %v937_v8 = vld [vmem:[#allocation2 + $0x44] ss:$8 sps:$4 sm:$0xff]   ;;  %v939_v9 = vld [vmem:[#allocation2 + $0x40] ss:$8 sps:$4 sm:$0xff]   ;;  %v940_v10 = vld [vmem:[#allocation2 + $0x54] ss:$8 sps:$4 sm:$0xff]  }
  0x39   :  { %v942_v11 = vld [vmem:[#allocation2 + $0x50] ss:$8 sps:$4 sm:$0xff]   ;;  %v943_v12 = vld [vmem:[#allocation2 + $0x64] ss:$8 sps:$4 sm:$0xff]   ;;  %v945_v13 = vld [vmem:[#allocation2 + $0x60] ss:$8 sps:$4 sm:$0xff]  }
  0x3a   :  { %v1241_v14 = vld [vmem:[%s1262_s0] sm:$0xff]  ;;  %v978_v18 = vld [vmem:[#allocation4 + $0x14] ss:$8 sps:$4 sm:$0xff]   ;;  %v948_v20 = vld [vmem:[#allocation2 + $0x70] ss:$8 sps:$4 sm:$0xff]  }
  0x3b   :  { %282 = vmatpush1.bf16.msra.mxu0 %v930_v3  ;;  %v823_v15 = vcombine.high %v1241_v14, %v1241_v14  ;;  %v975_v16 = vld [vmem:[#allocation4 + $0x4] ss:$8 sps:$4 sm:$0xff]   ;;  %v977_v17 = vld [vmem:[#allocation4] ss:$8 sps:$4 sm:$0xff]   ;;  %v946_v19 = vld [vmem:[#allocation2 + $0x74] ss:$8 sps:$4 sm:$0xff]   ;;  %v822_v55 = vcombine.low %v1241_v14, %v1241_v14 }
  0x3c   :  { %283 = vmatprep.subr.bf16.mxu0 %v931_v4  ;;  %526 = vmatprep.subr.bf16.mxu1 %v975_v16  ;;  %v980_v21 = vld [vmem:[#allocation4 + $0x10] ss:$8 sps:$4 sm:$0xff]   ;;  %v981_v22 = vld [vmem:[#allocation4 + $0x24] ss:$8 sps:$4 sm:$0xff]   ;;  %v951_v24 = vld [vmem:[#allocation2 + $0x80] ss:$8 sps:$4 sm:$0xff]  }
  0x3d   :  { %311 = vmatprep.mubr.bf16.mxu0 %v823_v15  ;;  %527 = vmatpush1.bf16.msra.mxu1 %v977_v17  ;;  %v949_v23 = vld [vmem:[#allocation2 + $0x84] ss:$8 sps:$4 sm:$0xff]   ;;  %v983_v25 = vld [vmem:[#allocation4 + $0x20] ss:$8 sps:$4 sm:$0xff]   ;;  %v984_v26 = vld [vmem:[#allocation4 + $0x34] ss:$8 sps:$4 sm:$0xff]  }
  0x3e   :  { %528 = vmatprep.subr.bf16.mxu1 %v978_v18  ;;  %v952_v27 = vld [vmem:[#allocation2 + $0x94] ss:$8 sps:$4 sm:$0xff]   ;;  %v954_v28 = vld [vmem:[#allocation2 + $0x90] ss:$8 sps:$4 sm:$0xff]   ;;  %v987_v30 = vld [vmem:[#allocation4 + $0x44] ss:$8 sps:$4 sm:$0xff]  }
  0x3f   :  { %284 = vmatpush1.bf16.msra.mxu0 %v933_v5  ;;  %v986_v29 = vld [vmem:[#allocation4 + $0x30] ss:$8 sps:$4 sm:$0xff]   ;;  %v955_v31 = vld [vmem:[#allocation2 + $0xa4] ss:$8 sps:$4 sm:$0xff]   ;;  %v957_v32 = vld [vmem:[#allocation2 + $0xa0] ss:$8 sps:$4 sm:$0xff]  }
  0x40   :  { %285 = vmatprep.subr.bf16.mxu0 %v934_v6  ;;  %v989_v33 = vld [vmem:[#allocation4 + $0x40] ss:$8 sps:$4 sm:$0xff]   ;;  %v990_v34 = vld [vmem:[#allocation4 + $0x54] ss:$8 sps:$4 sm:$0xff]   ;;  %v960_v36 = vld [vmem:[#allocation2 + $0xb0] ss:$8 sps:$4 sm:$0xff]  }
  0x41   :  { %529 = vmatpush1.bf16.msra.mxu1 %v980_v21  ;;  %v958_v35 = vld [vmem:[#allocation2 + $0xb4] ss:$8 sps:$4 sm:$0xff]   ;;  %v992_v37 = vld [vmem:[#allocation4 + $0x50] ss:$8 sps:$4 sm:$0xff]   ;;  %v993_v38 = vld [vmem:[#allocation4 + $0x64] ss:$8 sps:$4 sm:$0xff]  }
  0x42   :  { %530 = vmatprep.subr.bf16.mxu1 %v981_v22  ;;  %v961_v39 = vld [vmem:[#allocation2 + $0xc4] ss:$8 sps:$4 sm:$0xff]   ;;  %v995_v40 = vld [vmem:[#allocation4 + $0x60] ss:$8 sps:$4 sm:$0xff]   ;;  %v996_v42 = vld [vmem:[#allocation4 + $0x74] ss:$8 sps:$4 sm:$0xff]  }
  0x43   :  { %286 = vmatpush1.bf16.msra.mxu0 %v936_v7  ;;  %v963_v41 = vld [vmem:[#allocation2 + $0xc0] ss:$8 sps:$4 sm:$0xff]   ;;  %v964_v43 = vld [vmem:[#allocation2 + $0xd4] ss:$8 sps:$4 sm:$0xff]   ;;  %v998_v44 = vld [vmem:[#allocation4 + $0x70] ss:$8 sps:$4 sm:$0xff]  }
  0x44   :  { %287 = vmatprep.subr.bf16.mxu0 %v937_v8  ;;  %v966_v45 = vld [vmem:[#allocation2 + $0xd0] ss:$8 sps:$4 sm:$0xff]   ;;  %v999_v46 = vld [vmem:[#allocation4 + $0x84] ss:$8 sps:$4 sm:$0xff]   ;;  %v1001_v48 = vld [vmem:[#allocation4 + $0x80] ss:$8 sps:$4 sm:$0xff]  }
  0x45   :  { %531 = vmatpush1.bf16.msra.mxu1 %v983_v25  ;;  %v967_v47 = vld [vmem:[#allocation2 + $0xe4] ss:$8 sps:$4 sm:$0xff]   ;;  %v969_v49 = vld [vmem:[#allocation2 + $0xe0] ss:$8 sps:$4 sm:$0xff]   ;;  %v1002_v50 = vld [vmem:[#allocation4 + $0x94] ss:$8 sps:$4 sm:$0xff]  }
  0x46   :  { %532 = vmatprep.subr.bf16.mxu1 %v984_v26  ;;  %v970_v51 = vld [vmem:[#allocation2 + $0xf4] ss:$8 sps:$4 sm:$0xff]   ;;  %v1004_v52 = vld [vmem:[#allocation4 + $0x90] ss:$8 sps:$4 sm:$0xff]   ;;  %v1005_v54 = vld [vmem:[#allocation4 + $0xa4] ss:$8 sps:$4 sm:$0xff]  }
  0x47   :  { %288 = vmatpush1.bf16.msra.mxu0 %v939_v9  ;;  %v972_v53 = vld [vmem:[#allocation2 + $0xf0] ss:$8 sps:$4 sm:$0xff]   ;;  %v1007_v56 = vld [vmem:[#allocation4 + $0xa0] ss:$8 sps:$4 sm:$0xff]   ;;  %v1008_v57 = vld [vmem:[#allocation4 + $0xb4] ss:$8 sps:$4 sm:$0xff]  }
  0x48   :  { %289 = vmatprep.subr.bf16.mxu0 %v940_v10  ;;  %v1010_v58 = vld [vmem:[#allocation4 + $0xb0] ss:$8 sps:$4 sm:$0xff]   ;;  %v1011_v59 = vld [vmem:[#allocation4 + $0xc4] ss:$8 sps:$4 sm:$0xff]   ;;  %v1013_v60 = vld [vmem:[#allocation4 + $0xc0] ss:$8 sps:$4 sm:$0xff]  }
  0x49   :  { %533 = vmatpush1.bf16.msra.mxu1 %v986_v29  ;;  %v1014_v61 = vld [vmem:[#allocation4 + $0xd4] ss:$8 sps:$4 sm:$0xff]   ;;  %v1016_v62 = vld [vmem:[#allocation4 + $0xd0] ss:$8 sps:$4 sm:$0xff]   ;;  %v1017_v63 = vld [vmem:[#allocation4 + $0xe4] ss:$8 sps:$4 sm:$0xff]  }
  0x4a   :  { %534 = vmatprep.subr.bf16.mxu1 %v987_v30  ;;  %v1019_v0 = vld [vmem:[#allocation4 + $0xe0] ss:$8 sps:$4 sm:$0xff]   ;;  %v1020_v1 = vld [vmem:[#allocation4 + $0xf4] ss:$8 sps:$4 sm:$0xff]   ;;  %v1022_v2 = vld [vmem:[#allocation4 + $0xf0] ss:$8 sps:$4 sm:$0xff]  }
  0x4b   :  { %290 = vmatpush1.bf16.msra.mxu0 %v942_v11  ;;  %v1023_v3 = vld [vmem:[#allocation6] ss:$8 sps:$4 sm:$0xff]   ;;  %v1025_v4 = vld [vmem:[#allocation6 + $0x4] ss:$8 sps:$4 sm:$0xff]   ;;  %v1028_v5 = vld [vmem:[#allocation6 + $0x14] ss:$8 sps:$4 sm:$0xff]  }
  0x4c   :  { %291 = vmatprep.subr.bf16.mxu0 %v943_v12  ;;  %v1026_v6 = vld [vmem:[#allocation6 + $0x10] ss:$8 sps:$4 sm:$0xff]   ;;  %v1031_v7 = vld [vmem:[#allocation6 + $0x24] ss:$8 sps:$4 sm:$0xff]   ;;  %v1029_v8 = vld [vmem:[#allocation6 + $0x20] ss:$8 sps:$4 sm:$0xff]  }
  0x4d   :  { %535 = vmatpush1.bf16.msra.mxu1 %v989_v33  ;;  %v1034_v9 = vld [vmem:[#allocation6 + $0x34] ss:$8 sps:$4 sm:$0xff]   ;;  %v1032_v10 = vld [vmem:[#allocation6 + $0x30] ss:$8 sps:$4 sm:$0xff]   ;;  %v1037_v11 = vld [vmem:[#allocation6 + $0x44] ss:$8 sps:$4 sm:$0xff]   ;;  %v102_v33 = vlaneseq }
  0x4e   :  { %536 = vmatprep.subr.bf16.mxu1 %v990_v34  ;;  %v1035_v12 = vld [vmem:[#allocation6 + $0x40] ss:$8 sps:$4 sm:$0xff]   ;;  %v1038_v14 = vld [vmem:[#allocation6 + $0x50] ss:$8 sps:$4 sm:$0xff]   ;;  %v1043_v15 = vld [vmem:[#allocation6 + $0x64] ss:$8 sps:$4 sm:$0xff]  }
  0x4f   :  { %292 = vmatpush1.bf16.msra.mxu0 %v945_v13  ;;  %v1040_v13 = vld [vmem:[#allocation6 + $0x54] ss:$8 sps:$4 sm:$0xff]   ;;  %v1041_v16 = vld [vmem:[#allocation6 + $0x60] ss:$8 sps:$4 sm:$0xff]   ;;  %v1044_v18 = vld [vmem:[#allocation6 + $0x70] ss:$8 sps:$4 sm:$0xff]  }
  0x50   :  { %293 = vmatprep.subr.bf16.mxu0 %v946_v19  ;;  %v1046_v17 = vld [vmem:[#allocation6 + $0x74] ss:$8 sps:$4 sm:$0xff]   ;;  %v1049_v19 = vld [vmem:[#allocation6 + $0x84] ss:$8 sps:$4 sm:$0xff]   ;;  %v1050_v22 = vld [vmem:[#allocation6 + $0x90] ss:$8 sps:$4 sm:$0xff]  }
  0x51   :  { %537 = vmatpush1.bf16.msra.mxu1 %v992_v37  ;;  %v1052_v21 = vld [vmem:[#allocation6 + $0x94] ss:$8 sps:$4 sm:$0xff]   ;;  %v1056_v26 = vld [vmem:[#allocation6 + $0xb0] ss:$8 sps:$4 sm:$0xff]   ;;  %v103_v34 = vshrl.u32 %v102_v33, 7 }
  0x52   :  { %538 = vmatprep.subr.bf16.mxu1 %v993_v38  ;;  %v1058_v25 = vld [vmem:[#allocation6 + $0xb4] ss:$8 sps:$4 sm:$0xff]   ;;  %v1062_v30 = vld [vmem:[#allocation6 + $0xd0] ss:$8 sps:$4 sm:$0xff]  }
  0x53   :  { %294 = vmatpush1.bf16.msra.mxu0 %v948_v20  ;;  %v1047_v20 = vld [vmem:[#allocation6 + $0x80] ss:$8 sps:$4 sm:$0xff]   ;;  %v1064_v29 = vld [vmem:[#allocation6 + $0xd4] ss:$8 sps:$4 sm:$0xff]   ;;  %v108_v37 = vsub.s32 1, %v103_v34 }
  0x54   :  { %295 = vmatprep.subr.bf16.mxu0 %v949_v23  ;;  %v1055_v23 = vld [vmem:[#allocation6 + $0xa4] ss:$8 sps:$4 sm:$0xff]  }
  0x55   :  { %539 = vmatpush1.bf16.msra.mxu1 %v995_v40 }
  0x56   :  { %540 = vmatprep.subr.bf16.mxu1 %v996_v42 }
  0x57   :  { %296 = vmatpush1.bf16.msra.mxu0 %v951_v24  ;;  %v1053_v24 = vld [vmem:[#allocation6 + $0xa0] ss:$8 sps:$4 sm:$0xff]  }
  0x58   :  { %297 = vmatprep.subr.bf16.mxu0 %v952_v27  ;;  %v1061_v27 = vld [vmem:[#allocation6 + $0xc4] ss:$8 sps:$4 sm:$0xff]  }
  0x59   :  { %541 = vmatpush1.bf16.msra.mxu1 %v998_v44 }
  0x5a   :  { %542 = vmatprep.subr.bf16.mxu1 %v999_v46 }
  0x5b   :  { %298 = vmatpush1.bf16.msra.mxu0 %v954_v28  ;;  %v1059_v28 = vld [vmem:[#allocation6 + $0xc0] ss:$8 sps:$4 sm:$0xff]  }
  0x5c   :  { %299 = vmatprep.subr.bf16.mxu0 %v955_v31  ;;  %v1067_v31 = vld [vmem:[#allocation6 + $0xe4] ss:$8 sps:$4 sm:$0xff]  }
  0x5d   :  { %543 = vmatpush1.bf16.msra.mxu1 %v1001_v48  ;;  %v1070_v48 = vld [vmem:[#allocation6 + $0xf4] ss:$8 sps:$4 sm:$0xff]  }
  0x5e   :  { %544 = vmatprep.subr.bf16.mxu1 %v1002_v50  ;;  %v354_v50 = vld [vmem:[%s1266_s4] sm:$0x3] }
  0x5f   :  { %300 = vmatpush1.bf16.msra.mxu0 %v957_v32  ;;  %v1065_v32 = vld [vmem:[#allocation6 + $0xe0] ss:$8 sps:$4 sm:$0xff]  }
  0x60   :  { %301 = vmatprep.subr.bf16.mxu0 %v958_v35  ;;  %v104_v35 = vsub.s32 0, %v103_v34 }
  0x61   :  { %545 = vmatpush1.bf16.msra.mxu1 %v1004_v52  ;;  %v363_v52 = vrot.slane %v354_v50, %v108_v37 }
  0x62   :  { %546 = vmatprep.subr.bf16.mxu1 %v1005_v54 }
  0x63   :  { %302 = vmatpush1.bf16.msra.mxu0 %v960_v36  ;;  %v100_v36 = vld [vmem:[%s1264_s2] sm:$0x3] }
  0x64   :  { %303 = vmatprep.subr.bf16.mxu0 %v961_v39  ;;  %v105_v38 = vrot.slane %v100_v36, %v104_v35  ;;  %v109_v39 = vrot.slane %v100_v36, %v108_v37 }
  0x65   :  { %547 = vmatpush1.bf16.msra.mxu1 %v1007_v56 }
  0x66   :  { %548 = vmatprep.subr.bf16.mxu1 %v1008_v57 }
  0x67   :  { %304 = vmatpush1.bf16.msra.mxu0 %v963_v41 }
  0x68   :  { %305 = vmatprep.subr.bf16.mxu0 %v964_v43 }
  0x69   :  { %549 = vmatpush1.bf16.msra.mxu1 %v1010_v58 }
  0x6a   :  { %550 = vmatprep.subr.bf16.mxu1 %v1011_v59 }
  0x6b   :  { %306 = vmatpush1.bf16.msra.mxu0 %v966_v45 }
  0x6c   :  { %307 = vmatprep.subr.bf16.mxu0 %v967_v47 }
  0x6d   :  { %551 = vmatpush1.bf16.msra.mxu1 %v1013_v60 }
  0x6e   :  { %552 = vmatprep.subr.bf16.mxu1 %v1014_v61  ;;  %v601_v61 = vld [vmem:[%s1268_s6] sm:$0x3] }
  0x6f   :  { %308 = vmatpush1.bf16.msra.mxu0 %v969_v49  ;;  %v1068_v49 = vld [vmem:[#allocation6 + $0xf0] ss:$8 sps:$4 sm:$0xff]  }
  0x70   :  { %309 = vmatprep.subr.bf16.mxu0 %v970_v51  ;;  %v359_v51 = vrot.slane %v354_v50, %v104_v35 }
  0x71   :  { %553 = vmatpush1.bf16.msra.mxu1 %v1016_v62  ;;  %v606_v62 = vrot.slane %v601_v61, %v104_v35 }
  0x72   :  { %554 = vmatprep.subr.bf16.mxu1 %v1017_v63  ;;  %v610_v63 = vrot.slane %v601_v61, %v108_v37 }
  0x73   :  { %310 = vmatpush1.bf16.msra.mxu0 %v972_v53 }
  0x74   :  { %773 = vmatprep.subr.bf16.mxu0 %v1025_v4 }
  0x75   :  { %555 = vmatpush1.bf16.msra.mxu1 %v1019_v0 }
  0x76   :  { %312 = vmatmul.mubr.bf16.vlgmr.msra.gmra.mrb[0].mxu0 %v822_v55  ;;  %556 = vmatprep.subr.bf16.mxu1 %v1020_v1 }
  0x77   :  { %774 = vmatpush1.bf16.msra.mxu0 %v1023_v3 }
  0x78   :  { %775 = vmatprep.subr.bf16.mxu0 %v1028_v5 }
  0x79   :  { %557 = vmatpush1.bf16.msra.mxu1 %v1022_v2 }
  0x7b   :  { %776 = vmatpush1.bf16.msra.mxu0 %v1026_v6 }
  0x7c   :  { %777 = vmatprep.subr.bf16.mxu0 %v1031_v7 }
  0x7f   :  { %778 = vmatpush1.bf16.msra.mxu0 %v1029_v8 }
  0x80   :  { %779 = vmatprep.subr.bf16.mxu0 %v1034_v9 }
  0x83   :  { %780 = vmatpush1.bf16.msra.mxu0 %v1032_v10 }
  0x84   :  { %781 = vmatprep.subr.bf16.mxu0 %v1037_v11 }
  0x87   :  { %782 = vmatpush1.bf16.msra.mxu0 %v1035_v12 }
  0x88   :  { %783 = vmatprep.subr.bf16.mxu0 %v1040_v13 }
  0x8b   :  { %784 = vmatpush1.bf16.msra.mxu0 %v1038_v14 }
  0x8c   :  { %785 = vmatprep.subr.bf16.mxu0 %v1043_v15 }
  0x8f   :  { %786 = vmatpush1.bf16.msra.mxu0 %v1041_v16 }
  0x90   :  { %787 = vmatprep.subr.bf16.mxu0 %v1046_v17 }
  0x93   :  { %788 = vmatpush1.bf16.msra.mxu0 %v1044_v18 }
  0x94   :  { %789 = vmatprep.subr.bf16.mxu0 %v1049_v19 }
  0x97   :  { %790 = vmatpush1.bf16.msra.mxu0 %v1047_v20 }
  0x98   :  { %791 = vmatprep.subr.bf16.mxu0 %v1052_v21 }
  0x9b   :  { %792 = vmatpush1.bf16.msra.mxu0 %v1050_v22 }
  0x9c   :  { %793 = vmatprep.subr.bf16.mxu0 %v1055_v23 }
  0x9f   :  { %794 = vmatpush1.bf16.msra.mxu0 %v1053_v24 }
  0xa0   :  { %795 = vmatprep.subr.bf16.mxu0 %v1058_v25 }
  0xa3   :  { %796 = vmatpush1.bf16.msra.mxu0 %v1056_v26 }
  0xa4   :  { %797 = vmatprep.subr.bf16.mxu0 %v1061_v27 }
  0xa7   :  { %798 = vmatpush1.bf16.msra.mxu0 %v1059_v28 }
  0xa8   :  { %799 = vmatprep.subr.bf16.mxu0 %v1064_v29 }
  0xab   :  { %800 = vmatpush1.bf16.msra.mxu0 %v1062_v30 }
  0xac   :  { %801 = vmatprep.subr.bf16.mxu0 %v1067_v31 }
  0xaf   :  { %802 = vmatpush1.bf16.msra.mxu0 %v1065_v32 }
  0xb0   :  { %803 = vmatprep.subr.bf16.mxu0 %v1070_v48 }
  0xb3   :  { %804 = vmatpush1.bf16.msra.mxu0 %v1068_v49 }
 0x149   :  { %v313_v40 = vpop.f32.mrb[0].mxu0 }
 0x14a   :  { %v314_v41 = vadd.f32 %v313_v40, %v105_v38  ;;  %v315_v42 = vpop.f32.mrb[1].mxu0 }
 0x14b   :  { %v317_v43 = vpop.f32.mrb[2].mxu0  ;;  %v316_v44 = vadd.f32 %v315_v42, %v109_v39 }
 0x14c   :  { %v318_v45 = vpop.f32.mrb[3].mxu0  ;;  %v320_v47 = vpack.c.bf16 %v314_v41, %v314_v41 }
 0x14d   :  { %v321_v46 = vpack.c.bf16 %v316_v44, %v316_v44 }
 0x14f   :  { %558 = vmatprep.mubr.bf16.mxu1 %v321_v46 }
 0x150   :  { %559 = vmatmul.mubr.bf16.vlgmr.msra.gmra.mrb[0].mxu1 %v320_v47 }
 0x223   :  { %v560_v53 = vpop.f32.mrb[0].mxu1 }
 0x224   :  { %v561_v54 = vadd.f32 %v560_v53, %v359_v51  ;;  %v562_v55 = vpop.f32.mrb[1].mxu1 }
 0x225   :  { %v563_v56 = vadd.f32 %v562_v55, %v363_v52  ;;  %v564_v57 = vpop.f32.mrb[2].mxu1 }
 0x226   :  { %v565_v58 = vpop.f32.mrb[3].mxu1  ;;  %v567_v60 = vpack.c.bf16 %v561_v54, %v561_v54 }
 0x227   :  { %v568_v59 = vpack.c.bf16 %v563_v56, %v563_v56 }
 0x229   :  { %805 = vmatprep.mubr.bf16.mxu0 %v568_v59 }
 0x22a   :  { %806 = vmatmul.mubr.bf16.vlgmr.msra.gmra.mrb[4].mxu0 %v567_v60 }
 0x2fd   :  { %v807_v0 = vpop.f32.mrb[4].mxu0 }
 0x2fe   :  { %v808_v1 = vadd.f32 %v807_v0, %v606_v62  ;;  %v809_v2 = vpop.f32.mrb[5].mxu0 }
 0x2ff   :  { %v810_v3 = vadd.f32 %v809_v2, %v610_v63  ;;  %v811_v4 = vpop.f32.mrb[6].mxu0 }
 0x300   :  { %814 = vst [vmem:[%s1269_s7] sm:$0xff] %v808_v1  ;;  %v812_v5 = vpop.f32.mrb[7].mxu0 }
 0x301   :  { %815 = vst [vmem:[%s1269_s7 + $0x8] sm:$0xff] %v810_v3 }
 0x302   :  { %820 = vsyncpa [#allocation3], 1 }
 0x303   :  { %821 = vsyncpa [#allocation5], 1 }

</bundles_post_ra>
